<compile_context>
chip_gen: v7x
topology: tpu7x:2x2x1
jax: 0.10.0
libtpu: 0.0.40
codegen_flags: <defaults>
</compile_context>

<pallas_src>
import jax
import jax.numpy as jnp
from jax.experimental import pallas as pl
from jax.experimental.pallas import tpu as pltpu

_LANE = 128


def _round_up(n, m):
    return ((n + m - 1) // m) * m


def _pad2(a, rows, cols):
    r, c = a.shape
    return jnp.pad(a, ((0, rows - r), (0, cols - c)))


# ---------------------------------------------------------------------------
# Kernel: whole eval-mode forward chain for one (tb, Dp) batch tile.
# ---------------------------------------------------------------------------
def _disc_kernel(x_ref,
                 w1_ref, b1_ref,
                 w2_ref, b2_ref,
                 w3_ref, b3_ref,
                 w4_ref, b4_ref,
                 out_ref):
    x = x_ref[...]

    # dropout1 (identity) -> conv1 (== Linear D->2H) -> ReLU
    h = jnp.dot(x, w1_ref[...], preferred_element_type=jnp.float32) + b1_ref[...]
    h = jnp.maximum(h, 0.0)

    # bn1 folded into conv2; dropout2 identity -> conv2 (== Linear 2H->H) -> ReLU
    h = jnp.dot(h, w2_ref[...], preferred_element_type=jnp.float32) + b2_ref[...]
    h = jnp.maximum(h, 0.0)

    # bn2 folded into W1; dropout3 identity -> matmul W1 + b1 -> ReLU
    h = jnp.dot(h, w3_ref[...], preferred_element_type=jnp.float32) + b3_ref[...]
    h = jnp.maximum(h, 0.0)

    # bn3 + bn4 folded into a (1, Hp) weight row and a (1, 1) bias.
    # N=1 head: VPU multiply + lane reduction instead of a 1-column MXU matmul.
    y = jnp.sum(h * w4_ref[...], axis=-1, keepdims=True)          # (tb, 1)
    out_ref[...] = (y + b4_ref[...]).astype(out_ref.dtype)


# ---------------------------------------------------------------------------
# Parameter preparation: fold every eval-mode BatchNorm into adjacent weights.
# ---------------------------------------------------------------------------
def fold_params(p):
    wc1, bc1 = p["wc1"], p["bc1"]
    wc2, bc2 = p["wc2"], p["bc2"]
    w1, b1 = p["w1"], p["b1"]
    w2 = p["w2"]
    s1, t1 = p["s1"], p["t1"]
    s2, t2 = p["s2"], p["t2"]
    s3, t3 = p["s3"], p["t3"]
    s4, t4 = p["s4"], p["t4"]

    fw1 = wc1
    fb1 = bc1
    fw2 = wc2 * s1.T                     # bn1 folded into conv2
    fb2 = t1 @ wc2 + bc2
    fw3 = w1 * s2.T                      # bn2 folded into W1
    fb3 = t2 @ w1 + b1
    fw4 = (w2 * s3.T).T * s4             # bn3, bn4 folded into W2 (as (1, H) row)
    fb4 = (t3 @ w2) * s4 + t4            # (1, 1) final bias
    return fw1, fb1, fw2, fb2, fw3, fb3, fw4, fb4


# ---------------------------------------------------------------------------
# Wrapper
# ---------------------------------------------------------------------------
def adversarial_discriminator(x, params, *, tb=None):
    """x: (B, input_dim) float32 -> (B, 1) float32 (eval-mode forward)."""
    B, D = x.shape
    H2 = params["wc1"].shape[1]          # 2 * hidden_dim
    H = params["wc2"].shape[1]           # hidden_dim

    # Zero-pad every feature axis to a full 128-lane multiple.
    Dp, H2p, Hp = (_round_up(d, _LANE) for d in (D, H2, H))

    # Batch tile: one grid step for small batches; 256-row tiles otherwise.
    if tb is None:
        tb = _round_up(B, 8) if B <= 256 else 256
    Bp = _round_up(B, tb)
    grid = Bp // tb

    fw1, fb1, fw2, fb2, fw3, fb3, fw4, fb4 = fold_params(params)

    xk = _pad2(x.astype(jnp.float32), Bp, Dp)
    fw1 = _pad2(fw1, Dp, H2p)
    fb1 = _pad2(fb1, 1, H2p)
    fw2 = _pad2(fw2, H2p, Hp)
    fb2 = _pad2(fb2, 1, Hp)
    fw3 = _pad2(fw3, Hp, Hp)
    fb3 = _pad2(fb3, 1, Hp)
    fw4 = _pad2(fw4, 1, Hp)
    fb4 = fb4.astype(jnp.float32)

    full = lambda shape: pl.BlockSpec(shape, lambda i: (0, 0))

    grid_spec = pltpu.PrefetchScalarGridSpec(
        num_scalar_prefetch=0,
        grid=(grid,),
        in_specs=[
            pl.BlockSpec((tb, Dp), lambda i: (i, 0)),      # x batch tile
            full((Dp, H2p)), full((1, H2p)),               # conv1 weight / bias
            full((H2p, Hp)), full((1, Hp)),                # conv2 (+ bn1 folded)
            full((Hp, Hp)),  full((1, Hp)),                # W1    (+ bn2 folded)
            full((1, Hp)),   full((1, 1)),                 # W2 row (+ bn3/bn4)
        ],
        out_specs=pl.BlockSpec((tb, 1), lambda i: (i, 0)),  # (Bp, 1) output
    )

    out = pl.pallas_call(
        _disc_kernel,
        out_shape=jax.ShapeDtypeStruct((Bp, 1), jnp.float32),
        grid_spec=grid_spec,
        compiler_params=pltpu.CompilerParams(
            dimension_semantics=("parallel",)),
    )(xk, fw1, fb1, fw2, fb2, fw3, fb3, fw4, fb4)

    return out[:B]


# ---------------------------------------------------------------------------
# Pure-JAX reference of the same eval-mode forward pass (unfused math).
# ---------------------------------------------------------------------------
def _reference(x, p):
    h = jnp.maximum(x @ p["wc1"] + p["bc1"], 0.0) * p["s1"] + p["t1"]
    h = jnp.maximum(h @ p["wc2"] + p["bc2"], 0.0) * p["s2"] + p["t2"]
    h = jnp.maximum(h @ p["w1"] + p["b1"], 0.0) * p["s3"] + p["t3"]
    h = (h @ p["w2"]) * p["s4"] + p["t4"]
    return h


def _bn_fold(key, c, eps=1e-5):
    """Deterministic eval-mode BatchNorm params folded into scale/shift."""
    k1, k2, k3, k4 = jax.random.split(key, 4)
    gamma = 1.0 + 0.1 * jax.random.normal(k1, (1, c), jnp.float32)
    beta = 0.1 * jax.random.normal(k2, (1, c), jnp.float32)
    mean = 0.1 * jax.random.normal(k3, (1, c), jnp.float32)
    var = 0.5 + jnp.abs(jax.random.normal(k4, (1, c), jnp.float32))
    scale = gamma / jnp.sqrt(var + eps)
    shift = beta - mean * scale
    return scale, shift


def make_params(key, input_dim, hidden_dim):
    D, H = input_dim, hidden_dim
    H2 = 2 * H
    keys = jax.random.split(key, 12)

    def xavier(k, fan_in, fan_out, shape):
        lim = jnp.sqrt(6.0 / (fan_in + fan_out))
        return jax.random.uniform(k, shape, jnp.float32, -lim, lim)

    def kaiming_u(k, fan_in, shape):
        lim = 1.0 / jnp.sqrt(fan_in)
        return jax.random.uniform(k, shape, jnp.float32, -lim, lim)

    p = {}
    # conv1: torch weight (2H, 1, D) -> stored transposed as (D, 2H)
    p["wc1"] = kaiming_u(keys[0], D, (D, H2))
    p["bc1"] = kaiming_u(keys[1], D, (1, H2))
    # conv2: torch weight (H, 2H, 1) -> stored transposed as (2H, H)
    p["wc2"] = kaiming_u(keys[2], H2, (H2, H))
    p["bc2"] = kaiming_u(keys[3], H2, (1, H))
    # W1 (H, H) xavier, b1 randn(H)
    p["w1"] = xavier(keys[4], H, H, (H, H))
    p["b1"] = jax.random.normal(keys[5], (1, H), jnp.float32)
    # W2 (H, 1) xavier  (b2 exists in the module but is unused in forward)
    p["w2"] = xavier(keys[6], H, 1, (H, 1))
    # BatchNorm eval-mode folded affine params
    p["s1"], p["t1"] = _bn_fold(keys[7], H2)
    p["s2"], p["t2"] = _bn_fold(keys[8], H)
    p["s3"], p["t3"] = _bn_fold(keys[9], H)
    p["s4"], p["t4"] = _bn_fold(keys[10], 1)
    return p


if __name__ == "__main__":
    # Small shapes consistent with the module: x is (batch, input_dim).
    batch, input_dim, hidden_dim = 8, 16, 32

    key = jax.random.PRNGKey(0)
    kx, kp = jax.random.split(key)
    x = jax.random.normal(kx, (batch, input_dim), jnp.float32)
    params = make_params(kp, input_dim, hidden_dim)

    out = adversarial_discriminator(x, params)
    out = jax.block_until_ready(out)

    ref = _reference(x, params)
    assert out.shape == (batch, 1), out.shape
    assert jnp.allclose(out, ref, rtol=1e-4, atol=1e-4), (out, ref)
    print("KERNEL_OK")
</pallas_src>

<mosaic_0001>
module attributes {stable_mosaic.version = 11 : i64} {
  func.func @_disc_kernel(%arg0: i32, %arg1: memref<8x128xf32, #tpu.memory_space<vmem>>, %arg2: memref<128x128xf32, #tpu.memory_space<vmem>>, %arg3: memref<1x128xf32, #tpu.memory_space<vmem>>, %arg4: memref<128x128xf32, #tpu.memory_space<vmem>>, %arg5: memref<1x128xf32, #tpu.memory_space<vmem>>, %arg6: memref<128x128xf32, #tpu.memory_space<vmem>>, %arg7: memref<1x128xf32, #tpu.memory_space<vmem>>, %arg8: memref<1x128xf32, #tpu.memory_space<vmem>>, %arg9: memref<1x1xf32, #tpu.memory_space<vmem>>, %arg10: memref<8x1xf32, #tpu.memory_space<vmem>>) attributes {dimension_semantics = [#tpu.dimension_semantics<parallel>], iteration_bounds = array<i64: 1>, scalar_prefetch = 0 : i64, scratch_operands = 0 : i64, tpu.core_type = #tpu.core_type<tc>, window_params = [{transform_indices = @transform_0, window_bounds = array<i64: 8, 128>}, {pipeline_mode = #tpu.pipeline_mode<synchronous>, transform_indices = @transform_1, window_bounds = array<i64: 128, 128>}, {pipeline_mode = #tpu.pipeline_mode<synchronous>, transform_indices = @transform_2, window_bounds = array<i64: 1, 128>}, {pipeline_mode = #tpu.pipeline_mode<synchronous>, transform_indices = @transform_3, window_bounds = array<i64: 128, 128>}, {pipeline_mode = #tpu.pipeline_mode<synchronous>, transform_indices = @transform_4, window_bounds = array<i64: 1, 128>}, {pipeline_mode = #tpu.pipeline_mode<synchronous>, transform_indices = @transform_5, window_bounds = array<i64: 128, 128>}, {pipeline_mode = #tpu.pipeline_mode<synchronous>, transform_indices = @transform_6, window_bounds = array<i64: 1, 128>}, {pipeline_mode = #tpu.pipeline_mode<synchronous>, transform_indices = @transform_7, window_bounds = array<i64: 1, 128>}, {pipeline_mode = #tpu.pipeline_mode<synchronous>, transform_indices = @transform_8, window_bounds = array<i64: 1, 1>}, {transform_indices = @transform_9, window_bounds = array<i64: 8, 1>}]} {
    %c0 = arith.constant 0 : index
    %c0_0 = arith.constant 0 : index
    %0 = vector.load %arg1[%c0, %c0_0] : memref<8x128xf32, #tpu.memory_space<vmem>>, vector<8x128xf32>
    %c0_1 = arith.constant 0 : index
    %c0_2 = arith.constant 0 : index
    %1 = vector.load %arg2[%c0_1, %c0_2] : memref<128x128xf32, #tpu.memory_space<vmem>>, vector<128x128xf32>
    %cst = arith.constant dense<0.000000e+00> : vector<8x128xf32>
    %2 = tpu.matmul %0, %1, %cst {dimension_numbers = #tpu.dot_dimension_numbers<[1], [0], [0], [1], [0, 0, 1, 1], [], []>} : vector<8x128xf32>, vector<128x128xf32>, vector<8x128xf32> -> vector<8x128xf32>
    %c0_3 = arith.constant 0 : index
    %c0_4 = arith.constant 0 : index
    %3 = vector.load %arg3[%c0_3, %c0_4] : memref<1x128xf32, #tpu.memory_space<vmem>>, vector<1x128xf32>
    %4 = vector.broadcast %3 : vector<1x128xf32> to vector<8x128xf32>
    %5 = arith.addf %2, %4 : vector<8x128xf32>
    %cst_5 = arith.constant 0.000000e+00 : f32
    %6 = vector.broadcast %cst_5 : f32 to vector<8x128xf32>
    %7 = arith.maximumf %5, %6 : vector<8x128xf32>
    %c0_6 = arith.constant 0 : index
    %c0_7 = arith.constant 0 : index
    %8 = vector.load %arg4[%c0_6, %c0_7] : memref<128x128xf32, #tpu.memory_space<vmem>>, vector<128x128xf32>
    %cst_8 = arith.constant dense<0.000000e+00> : vector<8x128xf32>
    %9 = tpu.matmul %7, %8, %cst_8 {dimension_numbers = #tpu.dot_dimension_numbers<[1], [0], [0], [1], [0, 0, 1, 1], [], []>} : vector<8x128xf32>, vector<128x128xf32>, vector<8x128xf32> -> vector<8x128xf32>
    %c0_9 = arith.constant 0 : index
    %c0_10 = arith.constant 0 : index
    %10 = vector.load %arg5[%c0_9, %c0_10] : memref<1x128xf32, #tpu.memory_space<vmem>>, vector<1x128xf32>
    %11 = vector.broadcast %10 : vector<1x128xf32> to vector<8x128xf32>
    %12 = arith.addf %9, %11 : vector<8x128xf32>
    %cst_11 = arith.constant 0.000000e+00 : f32
    %13 = vector.broadcast %cst_11 : f32 to vector<8x128xf32>
    %14 = arith.maximumf %12, %13 : vector<8x128xf32>
    %c0_12 = arith.constant 0 : index
    %c0_13 = arith.constant 0 : index
    %15 = vector.load %arg6[%c0_12, %c0_13] : memref<128x128xf32, #tpu.memory_space<vmem>>, vector<128x128xf32>
    %cst_14 = arith.constant dense<0.000000e+00> : vector<8x128xf32>
    %16 = tpu.matmul %14, %15, %cst_14 {dimension_numbers = #tpu.dot_dimension_numbers<[1], [0], [0], [1], [0, 0, 1, 1], [], []>} : vector<8x128xf32>, vector<128x128xf32>, vector<8x128xf32> -> vector<8x128xf32>
    %c0_15 = arith.constant 0 : index
    %c0_16 = arith.constant 0 : index
    %17 = vector.load %arg7[%c0_15, %c0_16] : memref<1x128xf32, #tpu.memory_space<vmem>>, vector<1x128xf32>
    %18 = vector.broadcast %17 : vector<1x128xf32> to vector<8x128xf32>
    %19 = arith.addf %16, %18 : vector<8x128xf32>
    %cst_17 = arith.constant 0.000000e+00 : f32
    %20 = vector.broadcast %cst_17 : f32 to vector<8x128xf32>
    %21 = arith.maximumf %19, %20 : vector<8x128xf32>
    %c0_18 = arith.constant 0 : index
    %c0_19 = arith.constant 0 : index
    %22 = vector.load %arg8[%c0_18, %c0_19] : memref<1x128xf32, #tpu.memory_space<vmem>>, vector<1x128xf32>
    %23 = vector.broadcast %22 : vector<1x128xf32> to vector<8x128xf32>
    %24 = arith.mulf %21, %23 : vector<8x128xf32>
    %cst_20 = arith.constant dense<0.000000e+00> : vector<8xf32>
    %25 = vector.multi_reduction <add>, %24, %cst_20 [1] : vector<8x128xf32> to vector<8xf32>
    %26 = vector.shape_cast %25 : vector<8xf32> to vector<8x1xf32>
    %c0_21 = arith.constant 0 : index
    %c0_22 = arith.constant 0 : index
    %27 = vector.load %arg9[%c0_21, %c0_22] : memref<1x1xf32, #tpu.memory_space<vmem>>, vector<1x1xf32>
    %28 = vector.broadcast %27 : vector<1x1xf32> to vector<8x1xf32>
    %29 = arith.addf %26, %28 : vector<8x1xf32>
    %c0_23 = arith.constant 0 : index
    %c0_24 = arith.constant 0 : index
    %30 = vector.load %arg10[%c0_23, %c0_24] : memref<8x1xf32, #tpu.memory_space<vmem>>, vector<8x1xf32>
    tpu.vector_store %arg10[%c0_23, %c0_24], %29 {strides = array<i32>} : memref<8x1xf32, #tpu.memory_space<vmem>>, vector<8x1xf32>,
    return
  }
  func.func @transform_0(%arg0: i32) -> (i32, i32) {
    %c0_i32 = arith.constant 0 : i32
    %c0_i32_0 = arith.constant 0 : i32
    return %arg0, %c0_i32 : i32, i32
  }
  func.func @transform_1(%arg0: i32) -> (i32, i32) {
    %c0_i32 = arith.constant 0 : i32
    %c0_i32_0 = arith.constant 0 : i32
    %c0_i32_1 = arith.constant 0 : i32
    return %c0_i32, %c0_i32_0 : i32, i32
  }
  func.func @transform_2(%arg0: i32) -> (i32, i32) {
    %c0_i32 = arith.constant 0 : i32
    %c0_i32_0 = arith.constant 0 : i32
    %c0_i32_1 = arith.constant 0 : i32
    return %c0_i32, %c0_i32_0 : i32, i32
  }
  func.func @transform_3(%arg0: i32) -> (i32, i32) {
    %c0_i32 = arith.constant 0 : i32
    %c0_i32_0 = arith.constant 0 : i32
    %c0_i32_1 = arith.constant 0 : i32
    return %c0_i32, %c0_i32_0 : i32, i32
  }
  func.func @transform_4(%arg0: i32) -> (i32, i32) {
    %c0_i32 = arith.constant 0 : i32
    %c0_i32_0 = arith.constant 0 : i32
    %c0_i32_1 = arith.constant 0 : i32
    return %c0_i32, %c0_i32_0 : i32, i32
  }
  func.func @transform_5(%arg0: i32) -> (i32, i32) {
    %c0_i32 = arith.constant 0 : i32
    %c0_i32_0 = arith.constant 0 : i32
    %c0_i32_1 = arith.constant 0 : i32
    return %c0_i32, %c0_i32_0 : i32, i32
  }
  func.func @transform_6(%arg0: i32) -> (i32, i32) {
    %c0_i32 = arith.constant 0 : i32
    %c0_i32_0 = arith.constant 0 : i32
    %c0_i32_1 = arith.constant 0 : i32
    return %c0_i32, %c0_i32_0 : i32, i32
  }
  func.func @transform_7(%arg0: i32) -> (i32, i32) {
    %c0_i32 = arith.constant 0 : i32
    %c0_i32_0 = arith.constant 0 : i32
    %c0_i32_1 = arith.constant 0 : i32
    return %c0_i32, %c0_i32_0 : i32, i32
  }
  func.func @transform_8(%arg0: i32) -> (i32, i32) {
    %c0_i32 = arith.constant 0 : i32
    %c0_i32_0 = arith.constant 0 : i32
    %c0_i32_1 = arith.constant 0 : i32
    return %c0_i32, %c0_i32_0 : i32, i32
  }
  func.func @transform_9(%arg0: i32) -> (i32, i32) {
    %c0_i32 = arith.constant 0 : i32
    %c0_i32_0 = arith.constant 0 : i32
    return %arg0, %c0_i32 : i32, i32
  }
}

</mosaic_0001>

<bundles_post_ra>
// kernel: tpu_custom_call.1
= control target key start
LH: loop header
LB: loop body
LE: loop exit
PB: predicated region body
PF: predicated region fallthrough
CT: control target
= control target key end

     0   :  { %s897_s0 = inlined_call_operand.hbm [shape: f32[8,128], index: 0, kind: input, shape index: {}]   ;;  %s898_s1 = inlined_call_operand.hbm [shape: f32[128,128], index: 1, kind: input, shape index: {}]   ;;  %s899_s2 = inlined_call_operand.vmem [shape: f32[1,128], index: 2, kind: input, shape index: {}]   ;;  %s900_s3 = inlined_call_operand.hbm [shape: f32[128,128], index: 3, kind: input, shape index: {}]   ;;  %s901_s4 = inlined_call_operand.vmem [shape: f32[1,128], index: 4, kind: input, shape index: {}]   ;;  %s902_s5 = inlined_call_operand.hbm [shape: f32[128,128], index: 5, kind: input, shape index: {}]   ;;  %s903_s6 = inlined_call_operand.vmem [shape: f32[1,128], index: 6, kind: input, shape index: {}]   ;;  %s904_s7 = inlined_call_operand.vmem [shape: f32[1,128], index: 7, kind: input, shape index: {}]   ;;  %s905_s8 = inlined_call_operand.<no memory space> [shape: f32[1,1], index: 8, kind: input, shape index: {}]   ;;  %s906_s9 = inlined_call_operand.vmem [shape: f32[8,1], index: 9, kind: output, shape index: {}]  }
   0x1   :  { %v14_v0 = vstv %s905_s8 }
   0x2   :  { %15 = vst [vmem:[#allocation2] sm:$0x1] %v14_v0 }
   0x3   :  { %16 = vsyncpa [#allocation4], 0 }
   0x4   :  { %17 = vsyncpa [#allocation6], 0 }
   0x5   :  { %18 = vsyncpa [#allocation9], 0  ;;  %s733_s11 = smov [#allocation5]   ;;  %s639_s15 = scalar_lea.hbm %s898_s1, 2048 }
   0x6   :  { %s34_s12 = sshll.u32 %s733_s11, 4  ;;  %p640_p0 = scmp.ne.s32.totalorder %s898_s1, %s639_s15  ;;  %s35_s12 = int_to_ptr.vmem [resolvable:$true] %s34_s12 }
   0x7   :  { %p643_p1 = scmp.lt.u32.totalorder %s639_s15, %s898_s1 }
   0x9   :  { %p645_p2 = pnand %p643_p1, %p640_p0 }
   0xb   :  { %648 = shalt.err (!%p645_p2)
}
   0xc   :  { %s649_s8 = scalar_lea.vmem %s35_s12, 2048  ;;  %p654_p4 = scmp.lt.s32.totalorder %s35_s12, %s35_s12 }
   0xd   :  { %p650_p3 = scmp.ne.s32.totalorder %s35_s12, %s649_s8  ;;  %p655_p5 = scmp.lt.s32.totalorder %s649_s8, %s649_s8 }
   0xf   :  { %p656_p6 = por %p655_p5, %p654_p4 }
  0x11   :  { %p657_p7 = pnand %p656_p6, %p650_p3 }
  0x13   :  { %660 = shalt.err (!%p657_p7)
}
  0x14   :  { %s734_s20 = smov 128   ;;  %s735_s21 = smov 8  }
  0x15   :  { %40 = dma.hbm_to_vmem [thread:$0]  %s898_s1, 2048, %s35_s12, [#allocation6], %s734_s20, %s734_s20, %s735_s21  }
  0x16   :  { %s736_s24 = smov [#allocation3]   ;;  %s737_s26 = smov [#allocation7]  }
  0x17   :  { %s25_s25 = sshll.u32 %s736_s24, 4  ;;  %s48_s27 = sshll.u32 %s737_s26, 4  ;;  %s26_s25 = int_to_ptr.vmem [resolvable:$true] %s25_s25  ;;  %s49_s27 = int_to_ptr.vmem [resolvable:$true] %s48_s27 }
  0x18   :  { %s661_s30 = scalar_lea.hbm %s897_s0, 128 }
  0x19   :  { %p662_p8 = scmp.ne.s32.totalorder %s897_s0, %s661_s30  ;;  %p665_p9 = scmp.lt.u32.totalorder %s661_s30, %s897_s0 }
  0x1b   :  { %p667_p10 = pnand %p665_p9, %p662_p8 }
  0x1d   :  { %670 = shalt.err (!%p667_p10)
}
  0x1e   :  { %s671_s1 = scalar_lea.vmem %s26_s25, 128  ;;  %p676_p12 = scmp.lt.s32.totalorder %s26_s25, %s26_s25 }
  0x1f   :  { %p672_p11 = scmp.ne.s32.totalorder %s26_s25, %s671_s1  ;;  %p677_p13 = scmp.lt.s32.totalorder %s671_s1, %s671_s1 }
  0x21   :  { %p678_p0 = por %p677_p13, %p676_p12 }
  0x23   :  { %p679_p1 = pnand %p678_p0, %p672_p11 }
  0x25   :  { %682 = shalt.err (!%p679_p1)
}
  0x26   :  { %28 = dma.hbm_to_vmem [thread:$0]  %s897_s0, 128, %s26_s25, [#allocation4]  }
  0x27   :  { %s683_s18 = scalar_lea.hbm %s900_s3, 2048 }
  0x28   :  { %p684_p2 = scmp.ne.s32.totalorder %s900_s3, %s683_s18  ;;  %p687_p3 = scmp.lt.u32.totalorder %s683_s18, %s900_s3 }
  0x2a   :  { %p689_p4 = pnand %p687_p3, %p684_p2 }
  0x2c   :  { %692 = shalt.err (!%p689_p4)
}
  0x2d   :  { %s693_s24 = scalar_lea.vmem %s49_s27, 2048  ;;  %p698_p6 = scmp.lt.s32.totalorder %s49_s27, %s49_s27 }
  0x2e   :  { %p694_p5 = scmp.ne.s32.totalorder %s49_s27, %s693_s24  ;;  %p699_p7 = scmp.lt.s32.totalorder %s693_s24, %s693_s24 }
  0x30   :  { %p700_p8 = por %p699_p7, %p698_p6 }
  0x32   :  { %p701_p9 = pnand %p700_p8, %p694_p5 }
  0x34   :  { %704 = shalt.err (!%p701_p9)
}
  0x35   :  { %54 = dma.hbm_to_vmem [thread:$0]  %s900_s3, 2048, %s49_s27, [#allocation6], %s734_s20, %s734_s20, %s735_s21  }
  0x36   :  { %s738_s26 = smov [#allocation8]   ;;  %s705_s10 = scalar_lea.hbm %s902_s5, 2048 }
  0x37   :  { %s62_s28 = sshll.u32 %s738_s26, 4  ;;  %p706_p10 = scmp.ne.s32.totalorder %s902_s5, %s705_s10  ;;  %s63_s28 = int_to_ptr.vmem [resolvable:$true] %s62_s28 }
  0x38   :  { %p709_p11 = scmp.lt.u32.totalorder %s705_s10, %s902_s5 }
  0x3a   :  { %p711_p12 = pnand %p709_p11, %p706_p10 }
  0x3c   :  { %714 = shalt.err (!%p711_p12)
}
  0x3d   :  { %s715_s12 = scalar_lea.vmem %s63_s28, 2048  ;;  %p720_p0 = scmp.lt.s32.totalorder %s63_s28, %s63_s28 }
  0x3e   :  { %p716_p13 = scmp.ne.s32.totalorder %s63_s28, %s715_s12  ;;  %p721_p1 = scmp.lt.s32.totalorder %s715_s12, %s715_s12 }
  0x40   :  { %p722_p2 = por %p721_p1, %p720_p0 }
  0x42   :  { %p723_p3 = pnand %p722_p2, %p716_p13 }
  0x44   :  { %726 = shalt.err (!%p723_p3)
}
  0x45   :  { %68 = dma.hbm_to_vmem [thread:$0]  %s902_s5, 2048, %s63_s28, [#allocation9], %s734_s20, %s734_s20, %s735_s21  }
  0x46   :  { %727 = dma.done.wait [#allocation4], 128  }
  0x47   :  { %728 = vsyncadd [#allocation4], 4294967168 }
  0x48   :  { %729 = dma.done.wait [#allocation6], 4096  }
  0x49   :  { %730 = vsyncadd [#allocation6], 4294963200 }
  0x4a   :  { %731 = dma.done.wait [#allocation9], 2048  }
  0x4b   :  { %732 = vsyncadd [#allocation9], 4294965248  ;;  %v739_v1 = vmov 0.0|0.0   ;;  %vm740_vm0 = vmmov 0   ;;  %v741_v2 = vmov 0.0   ;;  %v88_v3 = vld [vmem:[#allocation5] sm:$0xff] }
  0x4c   :  { %558 = vmatprep.subr.bf16.mxu0 %v739_v1  ;;  %485 = vmatprep.mubr.msk.f32.mxu0 %vm740_vm0, %v741_v2  ;;  %v89_v4 = vld [vmem:[#allocation5 + $0x8] sm:$0xff]  ;;  %v90_v5 = vld [vmem:[#allocation5 + $0x10] sm:$0xff]  ;;  %v91_v7 = vld [vmem:[#allocation5 + $0x18] sm:$0xff]  ;;  %vm388_vm1 = vcmask 7168  }
  0x4d   :  { %582 = vmatprep.subr.bf16.mxu1 %v739_v1  ;;  %520 = vmatprep.mubr.msk.f32.mxu1 %vm740_vm0, %v741_v2  ;;  %v559_v6 = vpack.c.bf16 %v89_v4, %v88_v3  ;;  %v562_v8 = vpack.c.bf16 %v91_v7, %v90_v5  ;;  %v92_v9 = vld [vmem:[#allocation5 + $0x20] sm:$0xff]  ;;  %v93_v10 = vld [vmem:[#allocation5 + $0x28] sm:$0xff]  ;;  %v184_v13 = vld [vmem:[#allocation7 + $0x10] sm:$0xff] }
  0x4e   :  { %v182_v11 = vld [vmem:[#allocation7] sm:$0xff]  ;;  %v183_v12 = vld [vmem:[#allocation7 + $0x8] sm:$0xff]  ;;  %v185_v14 = vld [vmem:[#allocation7 + $0x18] sm:$0xff]  ;;  %v565_v15 = vpack.c.bf16 %v93_v10, %v92_v9 }
  0x4f   :  { %560 = vmatpush3.bf16.msra.mxu0 %v559_v6  ;;  %v583_v16 = vpack.c.bf16 %v183_v12, %v182_v11  ;;  %v94_v17 = vld [vmem:[#allocation5 + $0x30] sm:$0xff]  ;;  %v95_v18 = vld [vmem:[#allocation5 + $0x38] sm:$0xff]  ;;  %v586_v19 = vpack.c.bf16 %v185_v14, %v184_v13  ;;  %v186_v20 = vld [vmem:[#allocation7 + $0x20] sm:$0xff] }
  0x50   :  { %561 = vmatprep.subr.bf16.mxu0 %v739_v1  ;;  %v187_v21 = vld [vmem:[#allocation7 + $0x28] sm:$0xff]  ;;  %v568_v22 = vpack.c.bf16 %v95_v18, %v94_v17  ;;  %v96_v23 = vld [vmem:[#allocation5 + $0x40] sm:$0xff]  ;;  %v188_v26 = vld [vmem:[#allocation7 + $0x30] sm:$0xff] }
  0x51   :  { %584 = vmatpush3.bf16.msra.mxu1 %v583_v16  ;;  %v97_v24 = vld [vmem:[#allocation5 + $0x48] sm:$0xff]  ;;  %v589_v25 = vpack.c.bf16 %v187_v21, %v186_v20  ;;  %v189_v27 = vld [vmem:[#allocation7 + $0x38] sm:$0xff]  ;;  %v98_v29 = vld [vmem:[#allocation5 + $0x50] sm:$0xff] }
  0x52   :  { %585 = vmatprep.subr.bf16.mxu1 %v739_v1  ;;  %v571_v28 = vpack.c.bf16 %v97_v24, %v96_v23  ;;  %v99_v30 = vld [vmem:[#allocation5 + $0x58] sm:$0xff]  ;;  %v592_v31 = vpack.c.bf16 %v189_v27, %v188_v26  ;;  %v190_v32 = vld [vmem:[#allocation7 + $0x40] sm:$0xff]  ;;  %v191_v33 = vld [vmem:[#allocation7 + $0x48] sm:$0xff] }
  0x53   :  { %563 = vmatpush3.bf16.msra.mxu0 %v562_v8  ;;  %v574_v34 = vpack.c.bf16 %v99_v30, %v98_v29  ;;  %v100_v35 = vld [vmem:[#allocation5 + $0x60] sm:$0xff]  ;;  %v101_v36 = vld [vmem:[#allocation5 + $0x68] sm:$0xff]  ;;  %v595_v37 = vpack.c.bf16 %v191_v33, %v190_v32  ;;  %v192_v38 = vld [vmem:[#allocation7 + $0x50] sm:$0xff] }
  0x54   :  { %564 = vmatprep.subr.bf16.mxu0 %v739_v1  ;;  %v193_v39 = vld [vmem:[#allocation7 + $0x58] sm:$0xff]  ;;  %v577_v40 = vpack.c.bf16 %v101_v36, %v100_v35  ;;  %v102_v41 = vld [vmem:[#allocation5 + $0x70] sm:$0xff]  ;;  %v194_v44 = vld [vmem:[#allocation7 + $0x60] sm:$0xff] }
  0x55   :  { %587 = vmatpush3.bf16.msra.mxu1 %v586_v19  ;;  %v103_v42 = vld [vmem:[#allocation5 + $0x78] sm:$0xff]  ;;  %v598_v43 = vpack.c.bf16 %v193_v39, %v192_v38  ;;  %v195_v45 = vld [vmem:[#allocation7 + $0x68] sm:$0xff]  ;;  %v196_v49 = vld [vmem:[#allocation7 + $0x70] sm:$0xff] }
  0x56   :  { %588 = vmatprep.subr.bf16.mxu1 %v739_v1  ;;  %v580_v46 = vpack.c.bf16 %v103_v42, %v102_v41  ;;  %v601_v47 = vpack.c.bf16 %v195_v45, %v194_v44  ;;  %v87_v48 = vld [vmem:[#allocation3] sm:$0xff]  ;;  %v276_v52 = vld [vmem:[#allocation8] sm:$0xff]  ;;  %v277_v53 = vld [vmem:[#allocation8 + $0x8] sm:$0xff] }
  0x57   :  { %566 = vmatpush3.bf16.msra.mxu0 %v565_v15  ;;  %v197_v50 = vld [vmem:[#allocation7 + $0x78] sm:$0xff]  ;;  %v278_v54 = vld [vmem:[#allocation8 + $0x10] sm:$0xff]  ;;  %v607_v55 = vpack.c.bf16 %v277_v53, %v276_v52  ;;  %v280_v58 = vld [vmem:[#allocation8 + $0x20] sm:$0xff] }
  0x58   :  { %567 = vmatprep.subr.bf16.mxu0 %v739_v1  ;;  %v604_v51 = vpack.c.bf16 %v197_v50, %v196_v49  ;;  %v279_v56 = vld [vmem:[#allocation8 + $0x18] sm:$0xff]  ;;  %v281_v59 = vld [vmem:[#allocation8 + $0x28] sm:$0xff]  ;;  %v282_v61 = vld [vmem:[#allocation8 + $0x30] sm:$0xff] }
  0x59   :  { %590 = vmatpush3.bf16.msra.mxu1 %v589_v25  ;;  %v610_v57 = vpack.c.bf16 %v279_v56, %v278_v54  ;;  %v613_v60 = vpack.c.bf16 %v281_v59, %v280_v58  ;;  %v283_v62 = vld [vmem:[#allocation8 + $0x38] sm:$0xff]  ;;  %v284_v0 = vld [vmem:[#allocation8 + $0x40] sm:$0xff]  ;;  %v286_v4 = vld [vmem:[#allocation8 + $0x50] sm:$0xff] }
  0x5a   :  { %591 = vmatprep.subr.bf16.mxu1 %v739_v1  ;;  %v616_v63 = vpack.c.bf16 %v283_v62, %v282_v61  ;;  %v287_v5 = vld [vmem:[#allocation8 + $0x58] sm:$0xff]  ;;  %v288_v7 = vld [vmem:[#allocation8 + $0x60] sm:$0xff]  ;;  %v289_v8 = vld [vmem:[#allocation8 + $0x68] sm:$0xff] }
  0x5b   :  { %569 = vmatpush3.bf16.msra.mxu0 %v568_v22  ;;  %v622_v6 = vpack.c.bf16 %v287_v5, %v286_v4  ;;  %v625_v9 = vpack.c.bf16 %v289_v8, %v288_v7  ;;  %v397_v10 = vld [vmem:[%s899_s2] ss:$0 sm:$0xff]  ;;  %v291_v16 = vld [vmem:[#allocation8 + $0x78] sm:$0xff] }
  0x5c   :  { %570 = vmatprep.subr.bf16.mxu0 %v739_v1  ;;  %v290_v15 = vld [vmem:[#allocation8 + $0x70] sm:$0xff] }
  0x5d   :  { %593 = vmatpush3.bf16.msra.mxu1 %v592_v31  ;;  %v628_v17 = vpack.c.bf16 %v291_v16, %v290_v15  ;;  %v398_v18 = vld [vmem:[%s901_s4] ss:$0 sm:$0xff] }
  0x5e   :  { %594 = vmatprep.subr.bf16.mxu1 %v739_v1  ;;  %v399_v22 = vld [vmem:[%s903_s6] ss:$0 sm:$0xff] }
  0x5f   :  { %572 = vmatpush3.bf16.msra.mxu0 %v571_v28  ;;  %v400_v26 = vld [vmem:[%s904_s7] ss:$0 sm:$0xff] }
  0x60   :  { %573 = vmatprep.subr.bf16.mxu0 %v739_v1  ;;  %v401_v29 = vld [vmem:[#allocation2] ss:$0 sm:$0xff] }
  0x61   :  { %596 = vmatpush3.bf16.msra.mxu1 %v595_v37 }
  0x62   :  { %597 = vmatprep.subr.bf16.mxu1 %v739_v1 }
  0x63   :  { %575 = vmatpush3.bf16.msra.mxu0 %v574_v34 }
  0x64   :  { %576 = vmatprep.subr.bf16.mxu0 %v739_v1 }
  0x65   :  { %599 = vmatpush3.bf16.msra.mxu1 %v598_v43 }
  0x66   :  { %600 = vmatprep.subr.bf16.mxu1 %v739_v1 }
  0x67   :  { %578 = vmatpush3.bf16.msra.mxu0 %v577_v40 }
  0x68   :  { %579 = vmatprep.subr.bf16.mxu0 %v739_v1 }
  0x69   :  { %602 = vmatpush3.bf16.msra.mxu1 %v601_v47 }
  0x6a   :  { %603 = vmatprep.subr.bf16.mxu1 %v739_v1 }
  0x6b   :  { %581 = vmatpush3.bf16.msra.mxu0 %v580_v46 }
  0x6c   :  { %606 = vmatprep.subr.bf16.mxu0 %v739_v1 }
  0x6d   :  { %605 = vmatpush3.bf16.msra.mxu1 %v604_v51 }
  0x6e   :  { %486 = vmatmul.mubr.f32.vlgmr.msra.gmra.mrb[0].mxu0 %v87_v48 }
  0x6f   :  { %555 = vmatprep.mubr.msk.f32.mxu0 %vm740_vm0, %v741_v2  ;;  %608 = vmatpush3.bf16.msra.mxu0 %v607_v55  ;;  %v285_v2 = vld [vmem:[#allocation8 + $0x48] sm:$0xff] }
  0x70   :  { %609 = vmatprep.subr.bf16.mxu0 %v739_v1  ;;  %v619_v3 = vpack.c.bf16 %v285_v2, %v284_v0 }
  0x73   :  { %611 = vmatpush3.bf16.msra.mxu0 %v610_v57 }
  0x74   :  { %612 = vmatprep.subr.bf16.mxu0 %v739_v1 }
  0x77   :  { %614 = vmatpush3.bf16.msra.mxu0 %v613_v60 }
  0x78   :  { %615 = vmatprep.subr.bf16.mxu0 %v739_v1 }
  0x7b   :  { %617 = vmatpush3.bf16.msra.mxu0 %v616_v63 }
  0x7c   :  { %618 = vmatprep.subr.bf16.mxu0 %v739_v1 }
  0x7f   :  { %620 = vmatpush3.bf16.msra.mxu0 %v619_v3 }
  0x80   :  { %621 = vmatprep.subr.bf16.mxu0 %v739_v1 }
  0x83   :  { %623 = vmatpush3.bf16.msra.mxu0 %v622_v6 }
  0x84   :  { %624 = vmatprep.subr.bf16.mxu0 %v739_v1 }
  0x87   :  { %626 = vmatpush3.bf16.msra.mxu0 %v625_v9 }
  0x88   :  { %627 = vmatprep.subr.bf16.mxu0 %v739_v1 }
  0x8b   :  { %629 = vmatpush3.bf16.msra.mxu0 %v628_v17 }
 0x141   :  { %v177_v11 = vpop.f32.mrb[0].mxu0 }
 0x142   :  { %v178_v12 = vadd.f32 %v397_v10, %v177_v11  ;;  %v487_v13 = vpop.f32.mrb[1].mxu0 }
 0x144   :  { %v181_v14 = vmax.f32 %v178_v12, 0.0 }
 0x146   :  { %521 = vmatmul.mubr.f32.vlgmr.msra.gmra.mrb[0].mxu1 %v181_v14 }
 0x219   :  { %v271_v19 = vpop.f32.mrb[0].mxu1 }
 0x21a   :  { %v272_v20 = vadd.f32 %v398_v18, %v271_v19  ;;  %v522_v1 = vpop.f32.mrb[1].mxu1 }
 0x21c   :  { %v275_v21 = vmax.f32 %v272_v20, 0.0 }
 0x21e   :  { %556 = vmatmul.mubr.f32.vlgmr.msra.gmra.mrb[2].mxu0 %v275_v21 }
 0x2f1   :  { %v365_v23 = vpop.f32.mrb[2].mxu0 }
 0x2f2   :  { %v366_v24 = vadd.f32 %v399_v22, %v365_v23  ;;  %v557_v25 = vpop.f32.mrb[3].mxu0 }
 0x2f4   :  { %v369_v27 = vmax.f32 %v366_v24, 0.0 }
 0x2f6   :  { %v377_v28 = vmul.f32 %v400_v26, %v369_v27 }
 0x2f8   :  { %378 = vadd.xlane.f32.xlu0 %v377_v28 }
 0x385   :  { %v379_v30 = vpop.xlane.xlu0 %378 }
 0x386   :  { %v387_v31 = vadd.f32 %v401_v29, %v379_v30 }
 0x388   :  { %389 = vst.msk [vmem:[%s906_s9] sm:$0xff] %vm388_vm1, %v387_v31 }
 0x389   :  { %394 = vsyncpa [#allocation4], 1 }
 0x38a   :  { %395 = vsyncpa [#allocation6], 1 }
 0x38b   :  { %396 = vsyncpa [#allocation9], 1 }

</bundles_post_ra>
